<compile_context>
chip_gen: v7x
topology: tpu7x:2x2x1
jax: 0.10.0
libtpu: 0.0.40
codegen_flags: <defaults>
</compile_context>

<pallas_src>
import numpy as np
import jax
import jax.numpy as jnp
from jax.experimental import pallas as pl


# ----------------------------- fused Pallas kernel ---------------------------

def _fused_disc_kernel(x_ref,
                       w1_ref, b1_ref, a1_ref,
                       w2_ref, b2_ref, a2_ref,
                       wf1_ref, bf1_ref, af1_ref,
                       wf2_ref, bf2_ref, af2_ref,
                       wf3_ref, bf3_ref,
                       o_ref):
    """Whole Discriminator forward: 5 chained matmuls + PReLUs, all VMEM-resident."""
    wdt = w1_ref.dtype                      # bf16 (or f32) storage dtype of big weights

    def prelu(v, a_ref):
        return jnp.where(v >= 0.0, v, a_ref[...] * v)

    # conv block 1 (reflect pad + stride folded into w1_ref) + PReLU
    h = jnp.dot(x_ref[...].astype(wdt), w1_ref[...],
                preferred_element_type=jnp.float32) + b1_ref[...]
    h = prelu(h, a1_ref)
    # conv block 2 + PReLU
    h = jnp.dot(h.astype(wdt), w2_ref[...],
                preferred_element_type=jnp.float32) + b2_ref[...]
    h = prelu(h, a2_ref)
    # FC head: Linear/PReLU, Linear/PReLU, Linear
    h = jnp.dot(h.astype(wdt), wf1_ref[...],
                preferred_element_type=jnp.float32) + bf1_ref[...]
    h = prelu(h, af1_ref)
    h = jnp.dot(h.astype(wdt), wf2_ref[...],
                preferred_element_type=jnp.float32) + bf2_ref[...]
    h = prelu(h, af2_ref)
    o_ref[...] = jnp.dot(h, wf3_ref[...].astype(jnp.float32),
                         preferred_element_type=jnp.float32) + bf3_ref[...]


# ----------------------------- one-time parameter packing --------------------

def _expand_conv_block(w, b, alpha, lin, stride):
    """Fold reflect-pad + stride + kwidth of one GConv1DBlock into a dense matrix
    acting on channel-major flattened activations (PyTorch NCL .view(B,-1) order):
        out_flat[b, co*Lout + t] = sum_{ci,l} in_flat[b, ci*Lin + l] * big[ci*Lin+l, co*Lout+t]
    """
    w = np.asarray(w, np.float32)
    cout, cin, kw = w.shape
    pad_l = kw // 2 - 1 if stride > 1 else kw // 2
    pad_r = kw // 2
    lout = (lin + pad_l + pad_r - kw) // stride + 1
    big = np.zeros((cin * lin, cout * lout), np.float32)
    cols = np.arange(cout) * lout
    for t in range(lout):
        for k in range(kw):
            l = stride * t + k - pad_l
            if l < 0:                    # left reflect pad
                l = -l
            if l > lin - 1:              # right reflect pad (unused when kw-1 <= stride)
                l = 2 * (lin - 1) - l
            for ci in range(cin):
                big[ci * lin + l, cols + t] += w[:, ci, k]
    b_big = np.repeat(np.asarray(b, np.float32), lout)[None, :]
    a_big = np.repeat(np.asarray(alpha, np.float32), lout)[None, :]
    return big, b_big, a_big, lout


def pack_params(params, kwidth, poolings, in_len, weight_dtype=jnp.bfloat16):
    """One-time (load-time) packing: NOT part of the per-call jitted path."""
    del kwidth  # kernel widths are read from the weight shapes
    assert len(params["blocks"]) == 2 and len(poolings) == 2
    (w1, b1, a1), (w2, b2, a2) = params["blocks"]
    (wf1, bf1, af1), (wf2, bf2, af2), (wf3, bf3) = params["fc"]

    W1, B1, A1, l1 = _expand_conv_block(w1, b1, a1, in_len, poolings[0])
    W2, B2, A2, t2 = _expand_conv_block(w2, b2, a2, l1, poolings[1])
    c2 = w2.shape[0]
    assert wf1.shape[0] == c2 * t2, (wf1.shape, c2, t2)
    f1, f2 = wf1.shape[1], wf2.shape[1]

    wd = weight_dtype
    return dict(
        w1=jnp.asarray(W1, wd), b1=jnp.asarray(B1), a1=jnp.asarray(A1),
        w2=jnp.asarray(W2, wd), b2=jnp.asarray(B2), a2=jnp.asarray(A2),
        wf1=jnp.asarray(wf1, wd),
        bf1=jnp.asarray(bf1, jnp.float32).reshape(1, f1),
        af1=jnp.asarray(af1, jnp.float32).reshape(1, f1),
        wf2=jnp.asarray(wf2, wd),
        bf2=jnp.asarray(bf2, jnp.float32).reshape(1, f2),
        af2=jnp.asarray(af2, jnp.float32).reshape(1, f2),
        wf3=jnp.asarray(wf3, jnp.float32),
        bf3=jnp.asarray(bf3, jnp.float32).reshape(1, 1),
    )


# ----------------------------- per-call wrapper -------------------------------

def _full_vmem_spec(arr):
    zeros = (0,) * arr.ndim          # per-argument closure (no late-binding bug)
    return pl.BlockSpec(arr.shape, lambda: zeros)


def discriminator_forward(packed, x):
    B = x.shape[0]
    x_flat = x.reshape(B, -1)        # channel-major flatten; free under XLA

    args = (x_flat,
            packed["w1"], packed["b1"], packed["a1"],
            packed["w2"], packed["b2"], packed["a2"],
            packed["wf1"], packed["bf1"], packed["af1"],
            packed["wf2"], packed["bf2"], packed["af2"],
            packed["wf3"], packed["bf3"])

    mats = (packed["w1"], packed["w2"], packed["wf1"], packed["wf2"], packed["wf3"])
    flops = 2 * B * sum(int(m.shape[0]) * int(m.shape[1]) for m in mats)
    bytes_accessed = sum(int(a.size) * jnp.dtype(a.dtype).itemsize for a in args) + B * 4

    y = pl.pallas_call(
        _fused_disc_kernel,
        out_shape=jax.ShapeDtypeStruct((B, 1), jnp.float32),
        in_specs=[_full_vmem_spec(a) for a in args],
        out_specs=pl.BlockSpec((B, 1), lambda: (0, 0)),
        cost_estimate=pl.CostEstimate(flops=flops, transcendentals=0,
                                      bytes_accessed=bytes_accessed),
    )(*args)

    int_act = {"logit": y}
    return y, int_act


# ----------------------------- parameter init ---------------------------------

def init_discriminator(key, ninputs, fmaps, kwidth, pool_slen):
    params = {"blocks": [], "fc": []}
    ninp = ninputs
    for fmap in fmaps:
        key, k1, k2, k3 = jax.random.split(key, 4)
        w = 0.1 * jax.random.normal(k1, (fmap, ninp, kwidth), jnp.float32)   # Conv1d (O, I, K)
        b = 0.1 * jax.random.normal(k2, (fmap,), jnp.float32)
        a = jax.random.uniform(k3, (fmap,), jnp.float32, 0.0, 0.3)           # per-channel PReLU
        params["blocks"].append((w, b, a))
        ninp = fmap
    dims = [pool_slen * fmaps[-1], 256, 128, 1]
    for li in range(3):
        key, k1, k2, k3 = jax.random.split(key, 4)
        w = 0.05 * jax.random.normal(k1, (dims[li], dims[li + 1]), jnp.float32)  # stored (in, out)
        b = 0.05 * jax.random.normal(k2, (dims[li + 1],), jnp.float32)
        if li < 2:
            a = jax.random.uniform(k3, (dims[li + 1],), jnp.float32, 0.0, 0.3)
            params["fc"].append((w, b, a))
        else:
            params["fc"].append((w, b))
    return params


# ----------------------------- pure-JAX reference ------------------------------

def _ref_conv_block(x, w, b, a, kwidth, stride):
    P = (kwidth // 2 - 1, kwidth // 2) if stride > 1 else (kwidth // 2, kwidth // 2)
    x_p = jnp.pad(x, ((0, 0), (0, 0), P), mode="reflect")
    out = jax.lax.conv_general_dilated(
        x_p, w, window_strides=(stride,), padding="VALID",
        dimension_numbers=("NCH", "OIH", "NCH"))
    out = out + b[None, :, None]
    return jnp.where(out >= 0.0, out, a[None, :, None] * out)


def _ref_forward(params, x, kwidth, poolings):
    h = x
    for (w, b, a), pool in zip(params["blocks"], poolings):
        h = _ref_conv_block(h, w, b, a, kwidth, pool)
    flat = h.reshape(h.shape[0], -1)
    (w1, b1, a1), (w2, b2, a2), (w3, b3) = params["fc"]
    t = flat @ w1 + b1
    t = jnp.where(t >= 0.0, t, a1 * t)
    t = t @ w2 + b2
    t = jnp.where(t >= 0.0, t, a2 * t)
    return t @ w3 + b3


# ----------------------------- main --------------------------------------------

if __name__ == "__main__":
    # Discriminator(ninputs=2, fmaps=[8, 16], kwidth=5, poolings=[4, 4],
    #               pool_type='none', pool_slen=16, norm_type=None, bias=True)
    B, C_IN, L = 2, 2, 256
    FMAPS = [8, 16]
    KWIDTH = 5
    POOLINGS = [4, 4]
    POOL_SLEN = L // (POOLINGS[0] * POOLINGS[1])   # 16

    key = jax.random.PRNGKey(0)
    kx, kp = jax.random.split(key)
    x = jax.random.normal(kx, (B, C_IN, L), jnp.float32)
    params = init_discriminator(kp, C_IN, FMAPS, KWIDTH, POOL_SLEN)

    packed = pack_params(params, KWIDTH, POOLINGS, L)        # one-time, off the hot path

    fwd = jax.jit(lambda pk, inp: discriminator_forward(pk, inp)[0])
    y = jax.block_until_ready(fwd(packed, x))

    y_ref = jax.block_until_ready(_ref_forward(params, x, KWIDTH, POOLINGS))
    assert y.shape == (B, 1), y.shape
    # bf16 weight storage / bf16 MXU inputs with f32 accumulation -> ~1e-3 abs error.
    assert jnp.allclose(y, y_ref, atol=2e-2, rtol=2e-2), (y, y_ref)

    print("KERNEL_OK")
</pallas_src>

<mosaic_0001>
module attributes {stable_mosaic.version = 11 : i64} {
  func.func @_fused_disc_kernel(%arg0: memref<2x512xf32, #tpu.memory_space<vmem>>, %arg1: memref<512x512xbf16, #tpu.memory_space<vmem>>, %arg2: memref<1x512xf32, #tpu.memory_space<vmem>>, %arg3: memref<1x512xf32, #tpu.memory_space<vmem>>, %arg4: memref<512x256xbf16, #tpu.memory_space<vmem>>, %arg5: memref<1x256xf32, #tpu.memory_space<vmem>>, %arg6: memref<1x256xf32, #tpu.memory_space<vmem>>, %arg7: memref<256x256xbf16, #tpu.memory_space<vmem>>, %arg8: memref<1x256xf32, #tpu.memory_space<vmem>>, %arg9: memref<1x256xf32, #tpu.memory_space<vmem>>, %arg10: memref<256x128xbf16, #tpu.memory_space<vmem>>, %arg11: memref<1x128xf32, #tpu.memory_space<vmem>>, %arg12: memref<1x128xf32, #tpu.memory_space<vmem>>, %arg13: memref<128x1xf32, #tpu.memory_space<vmem>>, %arg14: memref<1x1xf32, #tpu.memory_space<vmem>>, %arg15: memref<2x1xf32, #tpu.memory_space<vmem>>) attributes {dimension_semantics = [], scalar_prefetch = 0 : i64, scratch_operands = 0 : i64, tpu.core_type = #tpu.core_type<tc>} {
    %c0 = arith.constant 0 : index
    %c0_0 = arith.constant 0 : index
    %0 = vector.load %arg0[%c0, %c0_0] : memref<2x512xf32, #tpu.memory_space<vmem>>, vector<2x512xf32>
    %1 = arith.truncf %0 : vector<2x512xf32> to vector<2x512xbf16>
    %c0_1 = arith.constant 0 : index
    %c0_2 = arith.constant 0 : index
    %2 = vector.load %arg1[%c0_1, %c0_2] : memref<512x512xbf16, #tpu.memory_space<vmem>>, vector<512x512xbf16>
    %cst = arith.constant dense<0.000000e+00> : vector<2x512xf32>
    %3 = tpu.matmul %1, %2, %cst {dimension_numbers = #tpu.dot_dimension_numbers<[1], [0], [0], [1], [0, 0, 1, 1], [], []>} : vector<2x512xbf16>, vector<512x512xbf16>, vector<2x512xf32> -> vector<2x512xf32>
    %c0_3 = arith.constant 0 : index
    %c0_4 = arith.constant 0 : index
    %4 = vector.load %arg2[%c0_3, %c0_4] : memref<1x512xf32, #tpu.memory_space<vmem>>, vector<1x512xf32>
    %5 = vector.broadcast %4 : vector<1x512xf32> to vector<2x512xf32>
    %6 = arith.addf %3, %5 : vector<2x512xf32>
    %cst_5 = arith.constant 0.000000e+00 : f32
    %7 = vector.broadcast %cst_5 : f32 to vector<2x512xf32>
    %8 = arith.cmpf oge, %6, %7 : vector<2x512xf32>
    %c0_6 = arith.constant 0 : index
    %c0_7 = arith.constant 0 : index
    %9 = vector.load %arg3[%c0_6, %c0_7] : memref<1x512xf32, #tpu.memory_space<vmem>>, vector<1x512xf32>
    %10 = vector.broadcast %9 : vector<1x512xf32> to vector<2x512xf32>
    %11 = arith.mulf %10, %6 : vector<2x512xf32>
    %12 = arith.select %8, %6, %11 : vector<2x512xi1>, vector<2x512xf32>
    %13 = arith.truncf %12 : vector<2x512xf32> to vector<2x512xbf16>
    %c0_8 = arith.constant 0 : index
    %c0_9 = arith.constant 0 : index
    %14 = vector.load %arg4[%c0_8, %c0_9] : memref<512x256xbf16, #tpu.memory_space<vmem>>, vector<512x256xbf16>
    %cst_10 = arith.constant dense<0.000000e+00> : vector<2x256xf32>
    %15 = tpu.matmul %13, %14, %cst_10 {dimension_numbers = #tpu.dot_dimension_numbers<[1], [0], [0], [1], [0, 0, 1, 1], [], []>} : vector<2x512xbf16>, vector<512x256xbf16>, vector<2x256xf32> -> vector<2x256xf32>
    %c0_11 = arith.constant 0 : index
    %c0_12 = arith.constant 0 : index
    %16 = vector.load %arg5[%c0_11, %c0_12] : memref<1x256xf32, #tpu.memory_space<vmem>>, vector<1x256xf32>
    %17 = vector.broadcast %16 : vector<1x256xf32> to vector<2x256xf32>
    %18 = arith.addf %15, %17 : vector<2x256xf32>
    %cst_13 = arith.constant 0.000000e+00 : f32
    %19 = vector.broadcast %cst_13 : f32 to vector<2x256xf32>
    %20 = arith.cmpf oge, %18, %19 : vector<2x256xf32>
    %c0_14 = arith.constant 0 : index
    %c0_15 = arith.constant 0 : index
    %21 = vector.load %arg6[%c0_14, %c0_15] : memref<1x256xf32, #tpu.memory_space<vmem>>, vector<1x256xf32>
    %22 = vector.broadcast %21 : vector<1x256xf32> to vector<2x256xf32>
    %23 = arith.mulf %22, %18 : vector<2x256xf32>
    %24 = arith.select %20, %18, %23 : vector<2x256xi1>, vector<2x256xf32>
    %25 = arith.truncf %24 : vector<2x256xf32> to vector<2x256xbf16>
    %c0_16 = arith.constant 0 : index
    %c0_17 = arith.constant 0 : index
    %26 = vector.load %arg7[%c0_16, %c0_17] : memref<256x256xbf16, #tpu.memory_space<vmem>>, vector<256x256xbf16>
    %cst_18 = arith.constant dense<0.000000e+00> : vector<2x256xf32>
    %27 = tpu.matmul %25, %26, %cst_18 {dimension_numbers = #tpu.dot_dimension_numbers<[1], [0], [0], [1], [0, 0, 1, 1], [], []>} : vector<2x256xbf16>, vector<256x256xbf16>, vector<2x256xf32> -> vector<2x256xf32>
    %c0_19 = arith.constant 0 : index
    %c0_20 = arith.constant 0 : index
    %28 = vector.load %arg8[%c0_19, %c0_20] : memref<1x256xf32, #tpu.memory_space<vmem>>, vector<1x256xf32>
    %29 = vector.broadcast %28 : vector<1x256xf32> to vector<2x256xf32>
    %30 = arith.addf %27, %29 : vector<2x256xf32>
    %cst_21 = arith.constant 0.000000e+00 : f32
    %31 = vector.broadcast %cst_21 : f32 to vector<2x256xf32>
    %32 = arith.cmpf oge, %30, %31 : vector<2x256xf32>
    %c0_22 = arith.constant 0 : index
    %c0_23 = arith.constant 0 : index
    %33 = vector.load %arg9[%c0_22, %c0_23] : memref<1x256xf32, #tpu.memory_space<vmem>>, vector<1x256xf32>
    %34 = vector.broadcast %33 : vector<1x256xf32> to vector<2x256xf32>
    %35 = arith.mulf %34, %30 : vector<2x256xf32>
    %36 = arith.select %32, %30, %35 : vector<2x256xi1>, vector<2x256xf32>
    %37 = arith.truncf %36 : vector<2x256xf32> to vector<2x256xbf16>
    %c0_24 = arith.constant 0 : index
    %c0_25 = arith.constant 0 : index
    %38 = vector.load %arg10[%c0_24, %c0_25] : memref<256x128xbf16, #tpu.memory_space<vmem>>, vector<256x128xbf16>
    %cst_26 = arith.constant dense<0.000000e+00> : vector<2x128xf32>
    %39 = tpu.matmul %37, %38, %cst_26 {dimension_numbers = #tpu.dot_dimension_numbers<[1], [0], [0], [1], [0, 0, 1, 1], [], []>} : vector<2x256xbf16>, vector<256x128xbf16>, vector<2x128xf32> -> vector<2x128xf32>
    %c0_27 = arith.constant 0 : index
    %c0_28 = arith.constant 0 : index
    %40 = vector.load %arg11[%c0_27, %c0_28] : memref<1x128xf32, #tpu.memory_space<vmem>>, vector<1x128xf32>
    %41 = vector.broadcast %40 : vector<1x128xf32> to vector<2x128xf32>
    %42 = arith.addf %39, %41 : vector<2x128xf32>
    %cst_29 = arith.constant 0.000000e+00 : f32
    %43 = vector.broadcast %cst_29 : f32 to vector<2x128xf32>
    %44 = arith.cmpf oge, %42, %43 : vector<2x128xf32>
    %c0_30 = arith.constant 0 : index
    %c0_31 = arith.constant 0 : index
    %45 = vector.load %arg12[%c0_30, %c0_31] : memref<1x128xf32, #tpu.memory_space<vmem>>, vector<1x128xf32>
    %46 = vector.broadcast %45 : vector<1x128xf32> to vector<2x128xf32>
    %47 = arith.mulf %46, %42 : vector<2x128xf32>
    %48 = arith.select %44, %42, %47 : vector<2x128xi1>, vector<2x128xf32>
    %c0_32 = arith.constant 0 : index
    %c0_33 = arith.constant 0 : index
    %49 = vector.load %arg13[%c0_32, %c0_33] : memref<128x1xf32, #tpu.memory_space<vmem>>, vector<128x1xf32>
    %cst_34 = arith.constant dense<0.000000e+00> : vector<2x1xf32>
    %50 = tpu.matmul %48, %49, %cst_34 {dimension_numbers = #tpu.dot_dimension_numbers<[1], [0], [0], [1], [0, 0, 1, 1], [], []>} : vector<2x128xf32>, vector<128x1xf32>, vector<2x1xf32> -> vector<2x1xf32>
    %c0_35 = arith.constant 0 : index
    %c0_36 = arith.constant 0 : index
    %51 = vector.load %arg14[%c0_35, %c0_36] : memref<1x1xf32, #tpu.memory_space<vmem>>, vector<1x1xf32>
    %52 = vector.broadcast %51 : vector<1x1xf32> to vector<2x1xf32>
    %53 = arith.addf %50, %52 : vector<2x1xf32>
    %c0_37 = arith.constant 0 : index
    %c0_38 = arith.constant 0 : index
    %54 = vector.load %arg15[%c0_37, %c0_38] : memref<2x1xf32, #tpu.memory_space<vmem>>, vector<2x1xf32>
    tpu.vector_store %arg15[%c0_37, %c0_38], %53 {strides = array<i32>} : memref<2x1xf32, #tpu.memory_space<vmem>>, vector<2x1xf32>,
    return
  }
}

</mosaic_0001>

<bundles_post_ra>
// kernel: _lambda_.1
= control target key start
LH: loop header
LB: loop body
LE: loop exit
PB: predicated region body
PF: predicated region fallthrough
CT: control target
= control target key end

     0   :  { %s3250_s0 = inlined_call_operand.vmem [shape: f32[2,512], index: 0, kind: input, shape index: {}]   ;;  %s3251_s1 = inlined_call_operand.hbm [shape: bf16[512,512], index: 1, kind: input, shape index: {}]   ;;  %s3252_s2 = inlined_call_operand.vmem [shape: f32[1,512], index: 2, kind: input, shape index: {}]   ;;  %s3253_s3 = inlined_call_operand.vmem [shape: f32[1,512], index: 3, kind: input, shape index: {}]   ;;  %s3254_s4 = inlined_call_operand.hbm [shape: bf16[512,256], index: 4, kind: input, shape index: {}]   ;;  %s3255_s5 = inlined_call_operand.vmem [shape: f32[1,256], index: 5, kind: input, shape index: {}]   ;;  %s3256_s6 = inlined_call_operand.vmem [shape: f32[1,256], index: 6, kind: input, shape index: {}]   ;;  %s3257_s7 = inlined_call_operand.hbm [shape: bf16[256,256], index: 7, kind: input, shape index: {}]   ;;  %s3258_s8 = inlined_call_operand.vmem [shape: f32[1,256], index: 8, kind: input, shape index: {}]   ;;  %s3259_s9 = inlined_call_operand.vmem [shape: f32[1,256], index: 9, kind: input, shape index: {}]   ;;  %s3260_s10 = inlined_call_operand.vmem [shape: bf16[256,128], index: 10, kind: input, shape index: {}]   ;;  %s3261_s11 = inlined_call_operand.vmem [shape: f32[1,128], index: 11, kind: input, shape index: {}]   ;;  %s3262_s12 = inlined_call_operand.vmem [shape: f32[1,128], index: 12, kind: input, shape index: {}]   ;;  %s3263_s13 = inlined_call_operand.vmem [shape: f32[128,1], index: 13, kind: input, shape index: {}]   ;;  %s3264_s14 = inlined_call_operand.<no memory space> [shape: f32[1,1], index: 14, kind: input, shape index: {}]   ;;  %s3265_s15 = inlined_call_operand.vmem [shape: f32[2,1], index: 15, kind: output, shape index: {}]  }
   0x1   :  { %v20_v0 = vstv %s3264_s14 }
   0x2   :  { %21 = vst [vmem:[#allocation2] sm:$0x1] %v20_v0 }
   0x3   :  { %22 = vsyncpa [#allocation4], 0 }
   0x4   :  { %23 = vsyncpa [#allocation6], 0  ;;  %s2955_s20 = smov [#allocation5]   ;;  %s2885_s24 = scalar_lea.hbm %s3254_s4, 8192 }
   0x5   :  { %s47_s21 = sshll.u32 %s2955_s20, 4  ;;  %p2886_p0 = scmp.ne.s32.totalorder %s3254_s4, %s2885_s24  ;;  %s48_s21 = int_to_ptr.vmem [resolvable:$true] %s47_s21 }
   0x6   :  { %p2889_p1 = scmp.lt.u32.totalorder %s2885_s24, %s3254_s4 }
   0x8   :  { %p2891_p2 = pnand %p2889_p1, %p2886_p0 }
   0xa   :  { %2894 = shalt.err (!%p2891_p2)
}
   0xb   :  { %s2895_s14 = scalar_lea.vmem %s48_s21, 8192  ;;  %p2900_p4 = scmp.lt.s32.totalorder %s48_s21, %s48_s21 }
   0xc   :  { %p2896_p3 = scmp.ne.s32.totalorder %s48_s21, %s2895_s14  ;;  %p2901_p5 = scmp.lt.s32.totalorder %s2895_s14, %s2895_s14 }
   0xe   :  { %p2902_p6 = por %p2901_p5, %p2900_p4 }
  0x10   :  { %p2903_p7 = pnand %p2902_p6, %p2896_p3 }
  0x12   :  { %2906 = shalt.err (!%p2903_p7)
}
  0x13   :  { %s2956_s29 = smov 128   ;;  %s2957_s30 = smov 8  }
  0x14   :  { %53 = dma.hbm_to_vmem [thread:$0]  %s3254_s4, 8192, %s48_s21, [#allocation6], %s2956_s29, %s2956_s29, %s2957_s30  }
  0x15   :  { %s2958_s18 = smov [#allocation3]   ;;  %s2907_s23 = scalar_lea.hbm %s3251_s1, 16384 }
  0x16   :  { %s31_s19 = sshll.u32 %s2958_s18, 4  ;;  %p2908_p8 = scmp.ne.s32.totalorder %s3251_s1, %s2907_s23  ;;  %s32_s19 = int_to_ptr.vmem [resolvable:$true] %s31_s19 }
  0x17   :  { %p2911_p9 = scmp.lt.u32.totalorder %s2907_s23, %s3251_s1 }
  0x19   :  { %p2913_p10 = pnand %p2911_p9, %p2908_p8 }
  0x1b   :  { %2916 = shalt.err (!%p2913_p10)
}
  0x1c   :  { %s2917_s28 = scalar_lea.vmem %s32_s19, 16384  ;;  %p2922_p12 = scmp.lt.s32.totalorder %s32_s19, %s32_s19 }
  0x1d   :  { %p2918_p11 = scmp.ne.s32.totalorder %s32_s19, %s2917_s28  ;;  %p2923_p13 = scmp.lt.s32.totalorder %s2917_s28, %s2917_s28 }
  0x1f   :  { %p2924_p0 = por %p2923_p13, %p2922_p12 }
  0x21   :  { %p2925_p1 = pnand %p2924_p0, %p2918_p11 }
  0x23   :  { %2928 = shalt.err (!%p2925_p1)
}
  0x24   :  { %s2959_s4 = smov 256   ;;  %s2960_s21 = smov 16  }
  0x25   :  { %37 = dma.hbm_to_vmem [thread:$0]  %s3251_s1, 16384, %s32_s19, [#allocation4], %s2959_s4, %s2959_s4, %s2960_s21  }
  0x26   :  { %s2961_s17 = smov [#allocation7]   ;;  %s2929_s23 = scalar_lea.hbm %s3257_s7, 4096 }
  0x27   :  { %s63_s18 = sshll.u32 %s2961_s17, 4  ;;  %p2930_p2 = scmp.ne.s32.totalorder %s3257_s7, %s2929_s23  ;;  %s64_s18 = int_to_ptr.vmem [resolvable:$true] %s63_s18 }
  0x28   :  { %p2933_p3 = scmp.lt.u32.totalorder %s2929_s23, %s3257_s7 }
  0x2a   :  { %p2935_p4 = pnand %p2933_p3, %p2930_p2 }
  0x2c   :  { %2938 = shalt.err (!%p2935_p4)
}
  0x2d   :  { %s2939_s28 = scalar_lea.vmem %s64_s18, 4096  ;;  %p2944_p6 = scmp.lt.s32.totalorder %s64_s18, %s64_s18 }
  0x2e   :  { %p2940_p5 = scmp.ne.s32.totalorder %s64_s18, %s2939_s28  ;;  %p2945_p7 = scmp.lt.s32.totalorder %s2939_s28, %s2939_s28 }
  0x30   :  { %p2946_p8 = por %p2945_p7, %p2944_p6 }
  0x32   :  { %p2947_p9 = pnand %p2946_p8, %p2940_p5 }
  0x34   :  { %2950 = shalt.err (!%p2947_p9)
}
  0x35   :  { %69 = dma.hbm_to_vmem [thread:$0]  %s3257_s7, 4096, %s64_s18, [#allocation6], %s2956_s29, %s2956_s29, %s2957_s30  }
  0x36   :  { %2951 = dma.done.wait [#allocation4], 16384  }
  0x37   :  { %2952 = vsyncadd [#allocation4], 4294950912 }
  0x38   :  { %2953 = dma.done.wait [#allocation6], 12288  }
  0x39   :  { %2954 = vsyncadd [#allocation6], 4294955008  ;;  %v2532_v1 = vld [vmem:[#allocation3 + $0x4] ss:$16 sps:$4 sm:$0xff]   ;;  %v2534_v2 = vld [vmem:[#allocation3 + $0xc] ss:$16 sps:$4 sm:$0xff]   ;;  %v100_v39 = vlaneseq }
  0x3a   :  { %911 = vmatprep.subr.bf16.mxu0 %v2532_v1  ;;  %v2536_v3 = vld [vmem:[#allocation3] ss:$16 sps:$4 sm:$0xff]   ;;  %v2537_v4 = vld [vmem:[#allocation3 + $0x8] ss:$16 sps:$4 sm:$0xff]   ;;  %993 = vmatprep.subr.bf16.mxu1 %v2534_v2  ;;  %v2538_v5 = vld [vmem:[#allocation3 + $0x24] ss:$16 sps:$4 sm:$0xff]  }
  0x3b   :  { %912 = vmatpush1.bf16.msra.mxu0 %v2536_v3  ;;  %994 = vmatpush1.bf16.msra.mxu1 %v2537_v4  ;;  %v2540_v6 = vld [vmem:[#allocation3 + $0x2c] ss:$16 sps:$4 sm:$0xff]   ;;  %v2542_v7 = vld [vmem:[#allocation3 + $0x20] ss:$16 sps:$4 sm:$0xff]   ;;  %v2543_v8 = vld [vmem:[#allocation3 + $0x28] ss:$16 sps:$4 sm:$0xff]  }
  0x3c   :  { %913 = vmatprep.subr.bf16.mxu0 %v2538_v5  ;;  %995 = vmatprep.subr.bf16.mxu1 %v2540_v6  ;;  %v2544_v9 = vld [vmem:[#allocation3 + $0x44] ss:$16 sps:$4 sm:$0xff]   ;;  %v2546_v10 = vld [vmem:[#allocation3 + $0x4c] ss:$16 sps:$4 sm:$0xff]   ;;  %v2548_v11 = vld [vmem:[#allocation3 + $0x40] ss:$16 sps:$4 sm:$0xff]  }
  0x3d   :  { %v2549_v12 = vld [vmem:[#allocation3 + $0x48] ss:$16 sps:$4 sm:$0xff]   ;;  %v2550_v13 = vld [vmem:[#allocation3 + $0x64] ss:$16 sps:$4 sm:$0xff]   ;;  %v2552_v14 = vld [vmem:[#allocation3 + $0x6c] ss:$16 sps:$4 sm:$0xff]  }
  0x3e   :  { %v2554_v15 = vld [vmem:[#allocation3 + $0x60] ss:$16 sps:$4 sm:$0xff]   ;;  %v2555_v16 = vld [vmem:[#allocation3 + $0x68] ss:$16 sps:$4 sm:$0xff]   ;;  %v2556_v17 = vld [vmem:[#allocation3 + $0x84] ss:$16 sps:$4 sm:$0xff]  }
  0x3f   :  { %914 = vmatpush1.bf16.msra.mxu0 %v2542_v7  ;;  %996 = vmatpush1.bf16.msra.mxu1 %v2543_v8  ;;  %v2558_v18 = vld [vmem:[#allocation3 + $0x8c] ss:$16 sps:$4 sm:$0xff]   ;;  %v2560_v19 = vld [vmem:[#allocation3 + $0x80] ss:$16 sps:$4 sm:$0xff]   ;;  %v2561_v20 = vld [vmem:[#allocation3 + $0x88] ss:$16 sps:$4 sm:$0xff]  }
  0x40   :  { %915 = vmatprep.subr.bf16.mxu0 %v2544_v9  ;;  %997 = vmatprep.subr.bf16.mxu1 %v2546_v10  ;;  %v2562_v21 = vld [vmem:[#allocation3 + $0xa4] ss:$16 sps:$4 sm:$0xff]   ;;  %v2564_v22 = vld [vmem:[#allocation3 + $0xac] ss:$16 sps:$4 sm:$0xff]   ;;  %v2566_v23 = vld [vmem:[#allocation3 + $0xa0] ss:$16 sps:$4 sm:$0xff]  }
  0x41   :  { %v2567_v24 = vld [vmem:[#allocation3 + $0xa8] ss:$16 sps:$4 sm:$0xff]   ;;  %v2568_v25 = vld [vmem:[#allocation3 + $0xc4] ss:$16 sps:$4 sm:$0xff]   ;;  %v2570_v26 = vld [vmem:[#allocation3 + $0xcc] ss:$16 sps:$4 sm:$0xff]  }
  0x42   :  { %v2572_v27 = vld [vmem:[#allocation3 + $0xc0] ss:$16 sps:$4 sm:$0xff]   ;;  %v2573_v28 = vld [vmem:[#allocation3 + $0xc8] ss:$16 sps:$4 sm:$0xff]   ;;  %v2574_v29 = vld [vmem:[#allocation3 + $0xe4] ss:$16 sps:$4 sm:$0xff]  }
  0x43   :  { %916 = vmatpush1.bf16.msra.mxu0 %v2548_v11  ;;  %998 = vmatpush1.bf16.msra.mxu1 %v2549_v12  ;;  %v2576_v30 = vld [vmem:[#allocation3 + $0xec] ss:$16 sps:$4 sm:$0xff]   ;;  %v2578_v31 = vld [vmem:[#allocation3 + $0xe0] ss:$16 sps:$4 sm:$0xff]   ;;  %v2579_v32 = vld [vmem:[#allocation3 + $0xe8] ss:$16 sps:$4 sm:$0xff]  }
  0x44   :  { %917 = vmatprep.subr.bf16.mxu0 %v2550_v13  ;;  %999 = vmatprep.subr.bf16.mxu1 %v2552_v14  ;;  %v2580_v33 = vld [vmem:[#allocation3 + $0x104] ss:$16 sps:$4 sm:$0xff]   ;;  %v2582_v34 = vld [vmem:[#allocation3 + $0x10c] ss:$16 sps:$4 sm:$0xff]   ;;  %v2584_v35 = vld [vmem:[#allocation3 + $0x100] ss:$16 sps:$4 sm:$0xff]  }
  0x45   :  { %v2585_v36 = vld [vmem:[#allocation3 + $0x108] ss:$16 sps:$4 sm:$0xff]   ;;  %v2962_v37 = vmov 1983009808   ;;  %v2586_v40 = vld [vmem:[#allocation3 + $0x124] ss:$16 sps:$4 sm:$0xff]  }
  0x46   :  { %v98_v38 = vunpack.c.l.s4 %v2962_v37  ;;  %v2588_v41 = vld [vmem:[#allocation3 + $0x12c] ss:$16 sps:$4 sm:$0xff]   ;;  %v2590_v42 = vld [vmem:[#allocation3 + $0x120] ss:$16 sps:$4 sm:$0xff]   ;;  %v3091_v44 = vshrl.u32 %v100_v39, 7  ;;  %vm2964_vm8 = vmmov 0  }
  0x47   :  { %918 = vmatpush1.bf16.msra.mxu0 %v2554_v15  ;;  %1000 = vmatpush1.bf16.msra.mxu1 %v2555_v16  ;;  %v2591_v45 = vld [vmem:[#allocation3 + $0x128] ss:$16 sps:$4 sm:$0xff]   ;;  %v2592_v46 = vld [vmem:[#allocation3 + $0x144] ss:$16 sps:$4 sm:$0xff]   ;;  %v2594_v47 = vld [vmem:[#allocation3 + $0x14c] ss:$16 sps:$4 sm:$0xff]  }
  0x48   :  { %919 = vmatprep.subr.bf16.mxu0 %v2556_v17  ;;  %1001 = vmatprep.subr.bf16.mxu1 %v2558_v18  ;;  %v99_v43 = vunpack.c.0.s8 %v98_v38  ;;  %v2596_v48 = vld [vmem:[#allocation3 + $0x140] ss:$16 sps:$4 sm:$0xff]   ;;  %v2597_v49 = vld [vmem:[#allocation3 + $0x148] ss:$16 sps:$4 sm:$0xff]   ;;  %v2598_v51 = vld [vmem:[#allocation3 + $0x164] ss:$16 sps:$4 sm:$0xff]  }
  0x49   :  { %v2600_v52 = vld [vmem:[#allocation3 + $0x16c] ss:$16 sps:$4 sm:$0xff]   ;;  %v2602_v54 = vld [vmem:[#allocation3 + $0x160] ss:$16 sps:$4 sm:$0xff]   ;;  %v2603_v56 = vld [vmem:[#allocation3 + $0x168] ss:$16 sps:$4 sm:$0xff]  }
  0x4a   :  { %v102_v50 = vsub.s32 %v99_v43, %v3091_v44  ;;  %v94_v53 = vld [vmem:[%s3250_s0] sm:$0xff]  ;;  %v2609_v62 = vld [vmem:[#allocation3 + $0x188] ss:$16 sps:$4 sm:$0xff]   ;;  %vm2154_vm10 = vcmask 1024  }
  0x4b   :  { %920 = vmatpush1.bf16.msra.mxu0 %v2560_v19  ;;  %1002 = vmatpush1.bf16.msra.mxu1 %v2561_v20  ;;  %v2604_v57 = vld [vmem:[#allocation3 + $0x184] ss:$16 sps:$4 sm:$0xff]   ;;  %v2606_v58 = vld [vmem:[#allocation3 + $0x18c] ss:$16 sps:$4 sm:$0xff]   ;;  %v2608_v60 = vld [vmem:[#allocation3 + $0x180] ss:$16 sps:$4 sm:$0xff]   ;;  %v96_v5 = vcombine.high %v94_v53, %v94_v53 }
  0x4c   :  { %921 = vmatprep.subr.bf16.mxu0 %v2562_v21  ;;  %1003 = vmatprep.subr.bf16.mxu1 %v2564_v22  ;;  %v103_v55 = vrot.slane %v94_v53, %v102_v50  ;;  %v2610_v63 = vld [vmem:[#allocation3 + $0x1a4] ss:$16 sps:$4 sm:$0xff]   ;;  %v2612_v0 = vld [vmem:[#allocation3 + $0x1ac] ss:$16 sps:$4 sm:$0xff]   ;;  %v2614_v1 = vld [vmem:[#allocation3 + $0x1a0] ss:$16 sps:$4 sm:$0xff]  }
  0x4d   :  { %v2615_v2 = vld [vmem:[#allocation3 + $0x1a8] ss:$16 sps:$4 sm:$0xff]   ;;  %v2616_v3 = vld [vmem:[#allocation3 + $0x1c4] ss:$16 sps:$4 sm:$0xff]   ;;  %v2618_v4 = vld [vmem:[#allocation3 + $0x1cc] ss:$16 sps:$4 sm:$0xff]   ;;  %v3097_v10 = vrot.slane %v96_v5, %v102_v50 }
  0x4e   :  { %v111_v59 = vcombine.high %v103_v55, %v103_v55  ;;  %v2620_v6 = vld [vmem:[#allocation3 + $0x1c0] ss:$16 sps:$4 sm:$0xff]   ;;  %v2621_v7 = vld [vmem:[#allocation3 + $0x1c8] ss:$16 sps:$4 sm:$0xff]   ;;  %v2622_v8 = vld [vmem:[#allocation3 + $0x1e4] ss:$16 sps:$4 sm:$0xff]   ;;  %v117_v17 = vpack.c.bf16 %v103_v55, %v103_v55 }
  0x4f   :  { %922 = vmatpush1.bf16.msra.mxu0 %v2566_v23  ;;  %1004 = vmatpush1.bf16.msra.mxu1 %v2567_v24  ;;  %v2624_v9 = vld [vmem:[#allocation3 + $0x1ec] ss:$16 sps:$4 sm:$0xff]   ;;  %v2626_v11 = vld [vmem:[#allocation3 + $0x1e0] ss:$16 sps:$4 sm:$0xff]   ;;  %v2627_v12 = vld [vmem:[#allocation3 + $0x1e8] ss:$16 sps:$4 sm:$0xff]   ;;  %v112_v15 = vcombine.high %v3097_v10, %v3097_v10 }
  0x50   :  { %923 = vmatprep.subr.bf16.mxu0 %v2568_v25  ;;  %1005 = vmatprep.subr.bf16.mxu1 %v2570_v26  ;;  %v118_v61 = vpack.c.bf16 %v111_v59, %v111_v59  ;;  %v2631_v13 = vld [vmem:[#allocation3 + $0x204] ss:$16 sps:$4 sm:$0xff]   ;;  %v2634_v14 = vld [vmem:[#allocation3 + $0x20c] ss:$16 sps:$4 sm:$0xff]   ;;  %v2629_v16 = vld [vmem:[#allocation3 + $0x200] ss:$16 sps:$4 sm:$0xff]  }
  0x51   :  { %v2632_v18 = vld [vmem:[#allocation3 + $0x208] ss:$16 sps:$4 sm:$0xff]   ;;  %v2637_v19 = vld [vmem:[#allocation3 + $0x224] ss:$16 sps:$4 sm:$0xff]   ;;  %v2640_v20 = vld [vmem:[#allocation3 + $0x22c] ss:$16 sps:$4 sm:$0xff]   ;;  %v120_v21 = vpack.c.bf16 %v112_v15, %v112_v15 }
  0x52   :  { %943 = vmatprep.mubr.bf16.mxu0 %v118_v61  ;;  %1025 = vmatprep.mubr.bf16.mxu1 %v118_v61  ;;  %v2635_v22 = vld [vmem:[#allocation3 + $0x220] ss:$16 sps:$4 sm:$0xff]   ;;  %v2638_v23 = vld [vmem:[#allocation3 + $0x228] ss:$16 sps:$4 sm:$0xff]   ;;  %v2643_v24 = vld [vmem:[#allocation3 + $0x244] ss:$16 sps:$4 sm:$0xff]  }
  0x53   :  { %924 = vmatpush1.bf16.msra.mxu0 %v2572_v27  ;;  %1006 = vmatpush1.bf16.msra.mxu1 %v2573_v28  ;;  %v2646_v25 = vld [vmem:[#allocation3 + $0x24c] ss:$16 sps:$4 sm:$0xff]   ;;  %v2641_v26 = vld [vmem:[#allocation3 + $0x240] ss:$16 sps:$4 sm:$0xff]   ;;  %v2644_v27 = vld [vmem:[#allocation3 + $0x248] ss:$16 sps:$4 sm:$0xff]  }
  0x54   :  { %925 = vmatprep.subr.bf16.mxu0 %v2574_v29  ;;  %1007 = vmatprep.subr.bf16.mxu1 %v2576_v30  ;;  %v2649_v28 = vld [vmem:[#allocation3 + $0x264] ss:$16 sps:$4 sm:$0xff]   ;;  %v2652_v29 = vld [vmem:[#allocation3 + $0x26c] ss:$16 sps:$4 sm:$0xff]   ;;  %v2647_v30 = vld [vmem:[#allocation3 + $0x260] ss:$16 sps:$4 sm:$0xff]  }
  0x55   :  { %v2664_v37 = vld [vmem:[#allocation3 + $0x2ac] ss:$16 sps:$4 sm:$0xff]   ;;  %v2659_v38 = vld [vmem:[#allocation3 + $0x2a0] ss:$16 sps:$4 sm:$0xff]   ;;  %v2662_v39 = vld [vmem:[#allocation3 + $0x2a8] ss:$16 sps:$4 sm:$0xff]  }
  0x56   :  { %v2668_v43 = vld [vmem:[#allocation3 + $0x2c8] ss:$16 sps:$4 sm:$0xff]   ;;  %v2682_v50 = vld [vmem:[#allocation3 + $0x30c] ss:$16 sps:$4 sm:$0xff]   ;;  %v2685_v53 = vld [vmem:[#allocation3 + $0x324] ss:$16 sps:$4 sm:$0xff]  }
  0x57   :  { %926 = vmatpush1.bf16.msra.mxu0 %v2578_v31  ;;  %1008 = vmatpush1.bf16.msra.mxu1 %v2579_v32  ;;  %v2650_v31 = vld [vmem:[#allocation3 + $0x268] ss:$16 sps:$4 sm:$0xff]   ;;  %v2655_v32 = vld [vmem:[#allocation3 + $0x284] ss:$16 sps:$4 sm:$0xff]   ;;  %v2683_v55 = vld [vmem:[#allocation3 + $0x320] ss:$16 sps:$4 sm:$0xff]  }
  0x58   :  { %927 = vmatprep.subr.bf16.mxu0 %v2580_v33  ;;  %1009 = vmatprep.subr.bf16.mxu1 %v2582_v34  ;;  %v2658_v33 = vld [vmem:[#allocation3 + $0x28c] ss:$16 sps:$4 sm:$0xff]   ;;  %v2653_v34 = vld [vmem:[#allocation3 + $0x280] ss:$16 sps:$4 sm:$0xff]   ;;  %v2697_v61 = vld [vmem:[#allocation3 + $0x364] ss:$16 sps:$4 sm:$0xff]  }
  0x59   :  { %v2689_v59 = vld [vmem:[#allocation3 + $0x340] ss:$16 sps:$4 sm:$0xff]   ;;  %v2709_v5 = vld [vmem:[#allocation3 + $0x3a4] ss:$16 sps:$4 sm:$0xff]   ;;  %v2724_v15 = vld [vmem:[#allocation3 + $0x3ec] ss:$16 sps:$4 sm:$0xff]  }
  0x5b   :  { %928 = vmatpush1.bf16.msra.mxu0 %v2584_v35  ;;  %1010 = vmatpush1.bf16.msra.mxu1 %v2585_v36  ;;  %v2656_v35 = vld [vmem:[#allocation3 + $0x288] ss:$16 sps:$4 sm:$0xff]   ;;  %v2661_v36 = vld [vmem:[#allocation3 + $0x2a4] ss:$16 sps:$4 sm:$0xff]  }
  0x5c   :  { %929 = vmatprep.subr.bf16.mxu0 %v2586_v40  ;;  %1011 = vmatprep.subr.bf16.mxu1 %v2588_v41  ;;  %v2667_v40 = vld [vmem:[#allocation3 + $0x2c4] ss:$16 sps:$4 sm:$0xff]   ;;  %v2670_v41 = vld [vmem:[#allocation3 + $0x2cc] ss:$16 sps:$4 sm:$0xff]  }
  0x5f   :  { %930 = vmatpush1.bf16.msra.mxu0 %v2590_v42  ;;  %1012 = vmatpush1.bf16.msra.mxu1 %v2591_v45  ;;  %v2665_v42 = vld [vmem:[#allocation3 + $0x2c0] ss:$16 sps:$4 sm:$0xff]   ;;  %v2673_v45 = vld [vmem:[#allocation3 + $0x2e4] ss:$16 sps:$4 sm:$0xff]  }
  0x60   :  { %931 = vmatprep.subr.bf16.mxu0 %v2592_v46  ;;  %1013 = vmatprep.subr.bf16.mxu1 %v2594_v47  ;;  %v2676_v46 = vld [vmem:[#allocation3 + $0x2ec] ss:$16 sps:$4 sm:$0xff]   ;;  %v2671_v47 = vld [vmem:[#allocation3 + $0x2e0] ss:$16 sps:$4 sm:$0xff]  }
  0x63   :  { %932 = vmatpush1.bf16.msra.mxu0 %v2596_v48  ;;  %1014 = vmatpush1.bf16.msra.mxu1 %v2597_v49  ;;  %v2674_v48 = vld [vmem:[#allocation3 + $0x2e8] ss:$16 sps:$4 sm:$0xff]   ;;  %v2679_v49 = vld [vmem:[#allocation3 + $0x304] ss:$16 sps:$4 sm:$0xff]  }
  0x64   :  { %933 = vmatprep.subr.bf16.mxu0 %v2598_v51  ;;  %1015 = vmatprep.subr.bf16.mxu1 %v2600_v52  ;;  %v2677_v51 = vld [vmem:[#allocation3 + $0x300] ss:$16 sps:$4 sm:$0xff]   ;;  %v2680_v52 = vld [vmem:[#allocation3 + $0x308] ss:$16 sps:$4 sm:$0xff]  }
  0x67   :  { %934 = vmatpush1.bf16.msra.mxu0 %v2602_v54  ;;  %1016 = vmatpush1.bf16.msra.mxu1 %v2603_v56  ;;  %v2688_v54 = vld [vmem:[#allocation3 + $0x32c] ss:$16 sps:$4 sm:$0xff]   ;;  %v2686_v56 = vld [vmem:[#allocation3 + $0x328] ss:$16 sps:$4 sm:$0xff]  }
  0x68   :  { %935 = vmatprep.subr.bf16.mxu0 %v2604_v57  ;;  %1017 = vmatprep.subr.bf16.mxu1 %v2606_v58  ;;  %v2691_v57 = vld [vmem:[#allocation3 + $0x344] ss:$16 sps:$4 sm:$0xff]   ;;  %v2694_v58 = vld [vmem:[#allocation3 + $0x34c] ss:$16 sps:$4 sm:$0xff]  }
  0x6b   :  { %936 = vmatpush1.bf16.msra.mxu0 %v2608_v60  ;;  %1018 = vmatpush1.bf16.msra.mxu1 %v2609_v62  ;;  %v2692_v60 = vld [vmem:[#allocation3 + $0x348] ss:$16 sps:$4 sm:$0xff]   ;;  %v2700_v62 = vld [vmem:[#allocation3 + $0x36c] ss:$16 sps:$4 sm:$0xff]  }
  0x6c   :  { %937 = vmatprep.subr.bf16.mxu0 %v2610_v63  ;;  %1019 = vmatprep.subr.bf16.mxu1 %v2612_v0  ;;  %v2695_v63 = vld [vmem:[#allocation3 + $0x360] ss:$16 sps:$4 sm:$0xff]   ;;  %v2698_v0 = vld [vmem:[#allocation3 + $0x368] ss:$16 sps:$4 sm:$0xff]  }
  0x6f   :  { %938 = vmatpush1.bf16.msra.mxu0 %v2614_v1  ;;  %1020 = vmatpush1.bf16.msra.mxu1 %v2615_v2  ;;  %v2703_v1 = vld [vmem:[#allocation3 + $0x384] ss:$16 sps:$4 sm:$0xff]   ;;  %v2706_v2 = vld [vmem:[#allocation3 + $0x38c] ss:$16 sps:$4 sm:$0xff]  }
  0x70   :  { %939 = vmatprep.subr.bf16.mxu0 %v2616_v3  ;;  %1021 = vmatprep.subr.bf16.mxu1 %v2618_v4  ;;  %v2701_v3 = vld [vmem:[#allocation3 + $0x380] ss:$16 sps:$4 sm:$0xff]   ;;  %v2704_v4 = vld [vmem:[#allocation3 + $0x388] ss:$16 sps:$4 sm:$0xff]  }
  0x73   :  { %940 = vmatpush1.bf16.msra.mxu0 %v2620_v6  ;;  %1022 = vmatpush1.bf16.msra.mxu1 %v2621_v7  ;;  %v2712_v6 = vld [vmem:[#allocation3 + $0x3ac] ss:$16 sps:$4 sm:$0xff]   ;;  %v2707_v7 = vld [vmem:[#allocation3 + $0x3a0] ss:$16 sps:$4 sm:$0xff]  }
  0x74   :  { %941 = vmatprep.subr.bf16.mxu0 %v2622_v8  ;;  %1023 = vmatprep.subr.bf16.mxu1 %v2624_v9  ;;  %v2710_v8 = vld [vmem:[#allocation3 + $0x3a8] ss:$16 sps:$4 sm:$0xff]   ;;  %v2715_v9 = vld [vmem:[#allocation3 + $0x3c4] ss:$16 sps:$4 sm:$0xff]  }
  0x77   :  { %942 = vmatpush1.bf16.msra.mxu0 %v2626_v11  ;;  %1024 = vmatpush1.bf16.msra.mxu1 %v2627_v12  ;;  %v2718_v11 = vld [vmem:[#allocation3 + $0x3cc] ss:$16 sps:$4 sm:$0xff]   ;;  %v2713_v12 = vld [vmem:[#allocation3 + $0x3c0] ss:$16 sps:$4 sm:$0xff]  }
  0x78   :  { %952 = vmatprep.subr.bf16.mxu0 %v2631_v13  ;;  %1034 = vmatprep.subr.bf16.mxu1 %v2634_v14  ;;  %v2716_v13 = vld [vmem:[#allocation3 + $0x3c8] ss:$16 sps:$4 sm:$0xff]   ;;  %v2721_v14 = vld [vmem:[#allocation3 + $0x3e4] ss:$16 sps:$4 sm:$0xff]  }
  0x7a   :  { %944 = vmatmul.mubr.bf16.vlgmr.msra.gmra.mrb[0].mxu0 %v117_v17  ;;  %1026 = vmatmul.mubr.bf16.vlgmr.msra.gmra.mrb[0].mxu1 %v117_v17  ;;  %v2722_v17 = vld [vmem:[#allocation3 + $0x3e8] ss:$16 sps:$4 sm:$0xff]  }
  0x7b   :  { %953 = vmatpush1.bf16.msra.mxu0 %v2629_v16  ;;  %1035 = vmatpush1.bf16.msra.mxu1 %v2632_v18  ;;  %v2719_v16 = vld [vmem:[#allocation3 + $0x3e0] ss:$16 sps:$4 sm:$0xff]   ;;  %v2727_v18 = vld [vmem:[#allocation5 + $0x4] ss:$8 sps:$4 sm:$0xff]  }
  0x7c   :  { %954 = vmatprep.subr.bf16.mxu0 %v2637_v19  ;;  %1036 = vmatprep.subr.bf16.mxu1 %v2640_v20  ;;  %v2725_v19 = vld [vmem:[#allocation5] ss:$8 sps:$4 sm:$0xff]   ;;  %v119_v20 = vpack.c.bf16 %v3097_v10, %v3097_v10 }
  0x7d   :  { %984 = vmatprep.mubr.bf16.mxu0 %v120_v21  ;;  %1066 = vmatprep.mubr.bf16.mxu1 %v120_v21  ;;  %v2730_v21 = vld [vmem:[#allocation5 + $0x14] ss:$8 sps:$4 sm:$0xff]   ;;  %v2737_v10 = vld [vmem:[#allocation5 + $0x40] ss:$8 sps:$4 sm:$0xff]  }
  0x7f   :  { %955 = vmatpush1.bf16.msra.mxu0 %v2635_v22  ;;  %1037 = vmatpush1.bf16.msra.mxu1 %v2638_v23  ;;  %v2728_v22 = vld [vmem:[#allocation5 + $0x10] ss:$8 sps:$4 sm:$0xff]   ;;  %v2733_v23 = vld [vmem:[#allocation5 + $0x24] ss:$8 sps:$4 sm:$0xff]  }
  0x80   :  { %956 = vmatprep.subr.bf16.mxu0 %v2643_v24  ;;  %1038 = vmatprep.subr.bf16.mxu1 %v2646_v25  ;;  %v2731_v24 = vld [vmem:[#allocation5 + $0x20] ss:$8 sps:$4 sm:$0xff]   ;;  %v2736_v25 = vld [vmem:[#allocation5 + $0x34] ss:$8 sps:$4 sm:$0xff]  }
  0x83   :  { %957 = vmatpush1.bf16.msra.mxu0 %v2641_v26  ;;  %1039 = vmatpush1.bf16.msra.mxu1 %v2644_v27  ;;  %v2734_v26 = vld [vmem:[#allocation5 + $0x30] ss:$8 sps:$4 sm:$0xff]   ;;  %v2739_v27 = vld [vmem:[#allocation5 + $0x44] ss:$8 sps:$4 sm:$0xff]  }
  0x84   :  { %958 = vmatprep.subr.bf16.mxu0 %v2649_v28  ;;  %1040 = vmatprep.subr.bf16.mxu1 %v2652_v29  ;;  %v2742_v28 = vld [vmem:[#allocation5 + $0x54] ss:$8 sps:$4 sm:$0xff]   ;;  %v2740_v29 = vld [vmem:[#allocation5 + $0x50] ss:$8 sps:$4 sm:$0xff]  }
  0x87   :  { %959 = vmatpush1.bf16.msra.mxu0 %v2647_v30  ;;  %1041 = vmatpush1.bf16.msra.mxu1 %v2650_v31  ;;  %v2745_v30 = vld [vmem:[#allocation5 + $0x64] ss:$8 sps:$4 sm:$0xff]   ;;  %v2743_v31 = vld [vmem:[#allocation5 + $0x60] ss:$8 sps:$4 sm:$0xff]  }
  0x88   :  { %960 = vmatprep.subr.bf16.mxu0 %v2655_v32  ;;  %1042 = vmatprep.subr.bf16.mxu1 %v2658_v33  ;;  %v2748_v32 = vld [vmem:[#allocation5 + $0x74] ss:$8 sps:$4 sm:$0xff]   ;;  %v2746_v33 = vld [vmem:[#allocation5 + $0x70] ss:$8 sps:$4 sm:$0xff]  }
  0x8b   :  { %961 = vmatpush1.bf16.msra.mxu0 %v2653_v34  ;;  %1043 = vmatpush1.bf16.msra.mxu1 %v2656_v35  ;;  %v2751_v34 = vld [vmem:[#allocation5 + $0x84] ss:$8 sps:$4 sm:$0xff]   ;;  %v2749_v35 = vld [vmem:[#allocation5 + $0x80] ss:$8 sps:$4 sm:$0xff]  }
  0x8c   :  { %962 = vmatprep.subr.bf16.mxu0 %v2661_v36  ;;  %1044 = vmatprep.subr.bf16.mxu1 %v2664_v37  ;;  %v2754_v36 = vld [vmem:[#allocation5 + $0x94] ss:$8 sps:$4 sm:$0xff]   ;;  %v2752_v37 = vld [vmem:[#allocation5 + $0x90] ss:$8 sps:$4 sm:$0xff]  }
  0x8f   :  { %963 = vmatpush1.bf16.msra.mxu0 %v2659_v38  ;;  %1045 = vmatpush1.bf16.msra.mxu1 %v2662_v39  ;;  %v2757_v38 = vld [vmem:[#allocation5 + $0xa4] ss:$8 sps:$4 sm:$0xff]   ;;  %v2755_v39 = vld [vmem:[#allocation5 + $0xa0] ss:$8 sps:$4 sm:$0xff]  }
  0x90   :  { %964 = vmatprep.subr.bf16.mxu0 %v2667_v40  ;;  %1046 = vmatprep.subr.bf16.mxu1 %v2670_v41  ;;  %v2760_v40 = vld [vmem:[#allocation5 + $0xb4] ss:$8 sps:$4 sm:$0xff]   ;;  %v2758_v41 = vld [vmem:[#allocation5 + $0xb0] ss:$8 sps:$4 sm:$0xff]  }
  0x93   :  { %965 = vmatpush1.bf16.msra.mxu0 %v2665_v42  ;;  %1047 = vmatpush1.bf16.msra.mxu1 %v2668_v43  ;;  %v2763_v42 = vld [vmem:[#allocation5 + $0xc4] ss:$8 sps:$4 sm:$0xff]   ;;  %v2761_v43 = vld [vmem:[#allocation5 + $0xc0] ss:$8 sps:$4 sm:$0xff]  }
  0x94   :  { %966 = vmatprep.subr.bf16.mxu0 %v2673_v45  ;;  %1048 = vmatprep.subr.bf16.mxu1 %v2676_v46  ;;  %v2766_v45 = vld [vmem:[#allocation5 + $0xd4] ss:$8 sps:$4 sm:$0xff]   ;;  %v2764_v46 = vld [vmem:[#allocation5 + $0xd0] ss:$8 sps:$4 sm:$0xff]  }
  0x97   :  { %967 = vmatpush1.bf16.msra.mxu0 %v2671_v47  ;;  %1049 = vmatpush1.bf16.msra.mxu1 %v2674_v48  ;;  %v2769_v47 = vld [vmem:[#allocation5 + $0xe4] ss:$8 sps:$4 sm:$0xff]   ;;  %v2767_v48 = vld [vmem:[#allocation5 + $0xe0] ss:$8 sps:$4 sm:$0xff]  }
  0x98   :  { %968 = vmatprep.subr.bf16.mxu0 %v2679_v49  ;;  %1050 = vmatprep.subr.bf16.mxu1 %v2682_v50  ;;  %v2772_v49 = vld [vmem:[#allocation5 + $0xf4] ss:$8 sps:$4 sm:$0xff]   ;;  %v2770_v50 = vld [vmem:[#allocation5 + $0xf0] ss:$8 sps:$4 sm:$0xff]  }
  0x9b   :  { %969 = vmatpush1.bf16.msra.mxu0 %v2677_v51  ;;  %1051 = vmatpush1.bf16.msra.mxu1 %v2680_v52  ;;  %v2775_v51 = vld [vmem:[#allocation5 + $0x104] ss:$8 sps:$4 sm:$0xff]   ;;  %v2821_v52 = vld [vmem:[#allocation7] ss:$8 sps:$4 sm:$0xff]  }
  0x9c   :  { %970 = vmatprep.subr.bf16.mxu0 %v2685_v53  ;;  %1052 = vmatprep.subr.bf16.mxu1 %v2688_v54  ;;  %v2823_v53 = vld [vmem:[#allocation7 + $0x4] ss:$8 sps:$4 sm:$0xff]   ;;  %v2826_v54 = vld [vmem:[#allocation7 + $0x14] ss:$8 sps:$4 sm:$0xff]  }
  0x9f   :  { %971 = vmatpush1.bf16.msra.mxu0 %v2683_v55  ;;  %1053 = vmatpush1.bf16.msra.mxu1 %v2686_v56  ;;  %v2824_v55 = vld [vmem:[#allocation7 + $0x10] ss:$8 sps:$4 sm:$0xff]   ;;  %v2829_v56 = vld [vmem:[#allocation7 + $0x24] ss:$8 sps:$4 sm:$0xff]  }
  0xa0   :  { %972 = vmatprep.subr.bf16.mxu0 %v2691_v57  ;;  %1054 = vmatprep.subr.bf16.mxu1 %v2694_v58  ;;  %v2827_v57 = vld [vmem:[#allocation7 + $0x20] ss:$8 sps:$4 sm:$0xff]   ;;  %v2832_v58 = vld [vmem:[#allocation7 + $0x34] ss:$8 sps:$4 sm:$0xff]  }
  0xa3   :  { %973 = vmatpush1.bf16.msra.mxu0 %v2689_v59  ;;  %1055 = vmatpush1.bf16.msra.mxu1 %v2692_v60  ;;  %v2830_v59 = vld [vmem:[#allocation7 + $0x30] ss:$8 sps:$4 sm:$0xff]   ;;  %v2835_v60 = vld [vmem:[#allocation7 + $0x44] ss:$8 sps:$4 sm:$0xff]  }
  0xa4   :  { %974 = vmatprep.subr.bf16.mxu0 %v2697_v61  ;;  %1056 = vmatprep.subr.bf16.mxu1 %v2700_v62  ;;  %v2833_v61 = vld [vmem:[#allocation7 + $0x40] ss:$8 sps:$4 sm:$0xff]   ;;  %v2838_v62 = vld [vmem:[#allocation7 + $0x54] ss:$8 sps:$4 sm:$0xff]  }
  0xa7   :  { %975 = vmatpush1.bf16.msra.mxu0 %v2695_v63  ;;  %1057 = vmatpush1.bf16.msra.mxu1 %v2698_v0  ;;  %v2836_v63 = vld [vmem:[#allocation7 + $0x50] ss:$8 sps:$4 sm:$0xff]   ;;  %v2841_v0 = vld [vmem:[#allocation7 + $0x64] ss:$8 sps:$4 sm:$0xff]  }
  0xa8   :  { %976 = vmatprep.subr.bf16.mxu0 %v2703_v1  ;;  %1058 = vmatprep.subr.bf16.mxu1 %v2706_v2  ;;  %v2839_v1 = vld [vmem:[#allocation7 + $0x60] ss:$8 sps:$4 sm:$0xff]   ;;  %v2844_v2 = vld [vmem:[#allocation7 + $0x74] ss:$8 sps:$4 sm:$0xff]  }
  0xab   :  { %977 = vmatpush1.bf16.msra.mxu0 %v2701_v3  ;;  %1059 = vmatpush1.bf16.msra.mxu1 %v2704_v4  ;;  %v2842_v3 = vld [vmem:[#allocation7 + $0x70] ss:$8 sps:$4 sm:$0xff]   ;;  %v2847_v4 = vld [vmem:[#allocation7 + $0x84] ss:$8 sps:$4 sm:$0xff]  }
  0xac   :  { %978 = vmatprep.subr.bf16.mxu0 %v2709_v5  ;;  %1060 = vmatprep.subr.bf16.mxu1 %v2712_v6  ;;  %v2845_v5 = vld [vmem:[#allocation7 + $0x80] ss:$8 sps:$4 sm:$0xff]   ;;  %v2850_v6 = vld [vmem:[#allocation7 + $0x94] ss:$8 sps:$4 sm:$0xff]  }
  0xaf   :  { %979 = vmatpush1.bf16.msra.mxu0 %v2707_v7  ;;  %1061 = vmatpush1.bf16.msra.mxu1 %v2710_v8  ;;  %v2848_v7 = vld [vmem:[#allocation7 + $0x90] ss:$8 sps:$4 sm:$0xff]   ;;  %v2853_v8 = vld [vmem:[#allocation7 + $0xa4] ss:$8 sps:$4 sm:$0xff]  }
  0xb0   :  { %980 = vmatprep.subr.bf16.mxu0 %v2715_v9  ;;  %1062 = vmatprep.subr.bf16.mxu1 %v2718_v11  ;;  %v2851_v9 = vld [vmem:[#allocation7 + $0xa0] ss:$8 sps:$4 sm:$0xff]   ;;  %v2856_v11 = vld [vmem:[#allocation7 + $0xb4] ss:$8 sps:$4 sm:$0xff]  }
  0xb3   :  { %981 = vmatpush1.bf16.msra.mxu0 %v2713_v12  ;;  %1063 = vmatpush1.bf16.msra.mxu1 %v2716_v13  ;;  %v2854_v12 = vld [vmem:[#allocation7 + $0xb0] ss:$8 sps:$4 sm:$0xff]   ;;  %v2859_v13 = vld [vmem:[#allocation7 + $0xc4] ss:$8 sps:$4 sm:$0xff]  }
  0xb4   :  { %982 = vmatprep.subr.bf16.mxu0 %v2721_v14  ;;  %1064 = vmatprep.subr.bf16.mxu1 %v2724_v15  ;;  %v3104_v14 = vsub.s32 0, %v3091_v44  ;;  %v261_v15 = vsub.s32 2, %v3091_v44 }
  0xb7   :  { %983 = vmatpush1.bf16.msra.mxu0 %v2719_v16  ;;  %1065 = vmatpush1.bf16.msra.mxu1 %v2722_v17  ;;  %v2857_v16 = vld [vmem:[#allocation7 + $0xc0] ss:$8 sps:$4 sm:$0xff]  }
  0xb8   :  { %1509 = vmatprep.subr.bf16.mxu0 %v2727_v18  ;;  %1815 = vmatprep.subr.bf16.mxu1 %v2823_v53  ;;  %v249_v17 = vld [vmem:[%s3252_s2] sm:$0xf]  ;;  %v3111_v18 = vsub.s32 1, %v3091_v44 }
  0xb9   :  { %v2778_v53 = vld [vmem:[#allocation5 + $0x114] ss:$8 sps:$4 sm:$0xff]  }
  0xba   :  { %985 = vmatmul.mubr.bf16.vlgmr.msra.gmra.mrb[0].mxu0 %v119_v20  ;;  %1067 = vmatmul.mubr.bf16.vlgmr.msra.gmra.mrb[0].mxu1 %v119_v20  ;;  %v2862_v20 = vld [vmem:[#allocation7 + $0xd4] ss:$8 sps:$4 sm:$0xff]  }
  0xbb   :  { %1510 = vmatpush1.bf16.msra.mxu0 %v2725_v19  ;;  %1816 = vmatpush1.bf16.msra.mxu1 %v2821_v52  ;;  %v265_v19 = vsub.s32 3, %v3091_v44 }
  0xbc   :  { %1511 = vmatprep.subr.bf16.mxu0 %v2730_v21  ;;  %1817 = vmatprep.subr.bf16.mxu1 %v2826_v54  ;;  %v1079_v21 = vld [vmem:[%s3253_s3] sm:$0xf] }
  0xbf   :  { %1512 = vmatpush1.bf16.msra.mxu0 %v2728_v22  ;;  %1818 = vmatpush1.bf16.msra.mxu1 %v2824_v55  ;;  %v254_v22 = vrot.slane %v249_v17, %v3104_v14  ;;  %v2776_v55 = vld [vmem:[#allocation5 + $0x110] ss:$8 sps:$4 sm:$0xff]  }
  0xc0   :  { %1513 = vmatprep.subr.bf16.mxu0 %v2733_v23  ;;  %1819 = vmatprep.subr.bf16.mxu1 %v2829_v56  ;;  %v262_v23 = vrot.slane %v249_v17, %v261_v15  ;;  %v2781_v56 = vld [vmem:[#allocation5 + $0x124] ss:$8 sps:$4 sm:$0xff]  }
  0xc3   :  { %1514 = vmatpush1.bf16.msra.mxu0 %v2731_v24  ;;  %1820 = vmatpush1.bf16.msra.mxu1 %v2827_v57  ;;  %v2860_v24 = vld [vmem:[#allocation7 + $0xd0] ss:$8 sps:$4 sm:$0xff]   ;;  %v2779_v57 = vld [vmem:[#allocation5 + $0x120] ss:$8 sps:$4 sm:$0xff]  }
  0xc4   :  { %1515 = vmatprep.subr.bf16.mxu0 %v2736_v25  ;;  %1821 = vmatprep.subr.bf16.mxu1 %v2832_v58  ;;  %v258_v25 = vrot.slane %v249_v17, %v3111_v18  ;;  %v2784_v58 = vld [vmem:[#allocation5 + $0x134] ss:$8 sps:$4 sm:$0xff]  }
  0xc7   :  { %1516 = vmatpush1.bf16.msra.mxu0 %v2734_v26  ;;  %1822 = vmatpush1.bf16.msra.mxu1 %v2830_v59  ;;  %v266_v26 = vrot.slane %v249_v17, %v265_v19  ;;  %v2782_v59 = vld [vmem:[#allocation5 + $0x130] ss:$8 sps:$4 sm:$0xff]  }
  0xc8   :  { %1517 = vmatprep.subr.bf16.mxu0 %v2739_v27  ;;  %1823 = vmatprep.subr.bf16.mxu1 %v2835_v60  ;;  %v1084_v27 = vrot.slane %v1079_v21, %v3104_v14  ;;  %v2787_v60 = vld [vmem:[#allocation5 + $0x144] ss:$8 sps:$4 sm:$0xff]   ;;  %v2812_v17 = vld [vmem:[#allocation5 + $0x1d0] ss:$8 sps:$4 sm:$0xff]  }
  0xcb   :  { %1518 = vmatpush1.bf16.msra.mxu0 %v2737_v10  ;;  %1824 = vmatpush1.bf16.msra.mxu1 %v2833_v61  ;;  %v1092_v10 = vrot.slane %v1079_v21, %v261_v15  ;;  %v2785_v61 = vld [vmem:[#allocation5 + $0x140] ss:$8 sps:$4 sm:$0xff]  }
  0xcc   :  { %1519 = vmatprep.subr.bf16.mxu0 %v2742_v28  ;;  %1825 = vmatprep.subr.bf16.mxu1 %v2838_v62  ;;  %v2790_v62 = vld [vmem:[#allocation5 + $0x154] ss:$8 sps:$4 sm:$0xff]   ;;  %v2809_v15 = vld [vmem:[#allocation5 + $0x1c0] ss:$8 sps:$4 sm:$0xff]  }
  0xcf   :  { %1520 = vmatpush1.bf16.msra.mxu0 %v2740_v29  ;;  %1826 = vmatpush1.bf16.msra.mxu1 %v2836_v63  ;;  %v1088_v29 = vrot.slane %v1079_v21, %v3111_v18  ;;  %v2788_v63 = vld [vmem:[#allocation5 + $0x150] ss:$8 sps:$4 sm:$0xff]  }
  0xd0   :  { %1521 = vmatprep.subr.bf16.mxu0 %v2745_v30  ;;  %1827 = vmatprep.subr.bf16.mxu1 %v2841_v0  ;;  %v1096_v30 = vrot.slane %v1079_v21, %v265_v19  ;;  %v2793_v0 = vld [vmem:[#allocation5 + $0x164] ss:$8 sps:$4 sm:$0xff]   ;;  %v2820_v21 = vld [vmem:[#allocation5 + $0x1f4] ss:$8 sps:$4 sm:$0xff]  }
  0xd1   :  { %v2817_v19 = vld [vmem:[#allocation5 + $0x1e4] ss:$8 sps:$4 sm:$0xff]  }
  0xd3   :  { %1522 = vmatpush1.bf16.msra.mxu0 %v2743_v31  ;;  %1828 = vmatpush1.bf16.msra.mxu1 %v2839_v1  ;;  %v2791_v1 = vld [vmem:[#allocation5 + $0x160] ss:$8 sps:$4 sm:$0xff]  }
  0xd4   :  { %1523 = vmatprep.subr.bf16.mxu0 %v2748_v32  ;;  %1829 = vmatprep.subr.bf16.mxu1 %v2844_v2  ;;  %v2796_v2 = vld [vmem:[#allocation5 + $0x174] ss:$8 sps:$4 sm:$0xff]  }
  0xd7   :  { %1524 = vmatpush1.bf16.msra.mxu0 %v2746_v33  ;;  %1830 = vmatpush1.bf16.msra.mxu1 %v2842_v3  ;;  %v2794_v3 = vld [vmem:[#allocation5 + $0x170] ss:$8 sps:$4 sm:$0xff]  }
  0xd8   :  { %1525 = vmatprep.subr.bf16.mxu0 %v2751_v34  ;;  %1831 = vmatprep.subr.bf16.mxu1 %v2847_v4  ;;  %v2799_v4 = vld [vmem:[#allocation5 + $0x184] ss:$8 sps:$4 sm:$0xff]  }
  0xdb   :  { %1526 = vmatpush1.bf16.msra.mxu0 %v2749_v35  ;;  %1832 = vmatpush1.bf16.msra.mxu1 %v2845_v5  ;;  %v2797_v5 = vld [vmem:[#allocation5 + $0x180] ss:$8 sps:$4 sm:$0xff]  }
  0xdc   :  { %1527 = vmatprep.subr.bf16.mxu0 %v2754_v36  ;;  %1833 = vmatprep.subr.bf16.mxu1 %v2850_v6  ;;  %v2802_v6 = vld [vmem:[#allocation5 + $0x194] ss:$8 sps:$4 sm:$0xff]  }
  0xdf   :  { %1528 = vmatpush1.bf16.msra.mxu0 %v2752_v37  ;;  %1834 = vmatpush1.bf16.msra.mxu1 %v2848_v7  ;;  %v2800_v7 = vld [vmem:[#allocation5 + $0x190] ss:$8 sps:$4 sm:$0xff]  }
  0xe0   :  { %1529 = vmatprep.subr.bf16.mxu0 %v2757_v38  ;;  %1835 = vmatprep.subr.bf16.mxu1 %v2853_v8  ;;  %v2805_v8 = vld [vmem:[#allocation5 + $0x1a4] ss:$8 sps:$4 sm:$0xff]  }
  0xe3   :  { %1530 = vmatpush1.bf16.msra.mxu0 %v2755_v39  ;;  %1836 = vmatpush1.bf16.msra.mxu1 %v2851_v9  ;;  %v2803_v9 = vld [vmem:[#allocation5 + $0x1a0] ss:$8 sps:$4 sm:$0xff]  }
  0xe4   :  { %1531 = vmatprep.subr.bf16.mxu0 %v2760_v40  ;;  %1837 = vmatprep.subr.bf16.mxu1 %v2856_v11  ;;  %v2808_v11 = vld [vmem:[#allocation5 + $0x1b4] ss:$8 sps:$4 sm:$0xff]  }
  0xe7   :  { %1532 = vmatpush1.bf16.msra.mxu0 %v2758_v41  ;;  %1838 = vmatpush1.bf16.msra.mxu1 %v2854_v12  ;;  %v2806_v12 = vld [vmem:[#allocation5 + $0x1b0] ss:$8 sps:$4 sm:$0xff]  }
  0xe8   :  { %1533 = vmatprep.subr.bf16.mxu0 %v2763_v42  ;;  %1839 = vmatprep.subr.bf16.mxu1 %v2859_v13  ;;  %v2811_v13 = vld [vmem:[#allocation5 + $0x1c4] ss:$8 sps:$4 sm:$0xff]  }
  0xeb   :  { %1534 = vmatpush1.bf16.msra.mxu0 %v2761_v43  ;;  %1840 = vmatpush1.bf16.msra.mxu1 %v2857_v16  ;;  %v2814_v16 = vld [vmem:[#allocation5 + $0x1d4] ss:$8 sps:$4 sm:$0xff]  }
  0xec   :  { %1535 = vmatprep.subr.bf16.mxu0 %v2766_v45  ;;  %1841 = vmatprep.subr.bf16.mxu1 %v2862_v20  ;;  %v2815_v20 = vld [vmem:[#allocation5 + $0x1e0] ss:$8 sps:$4 sm:$0xff]  }
  0xef   :  { %1536 = vmatpush1.bf16.msra.mxu0 %v2764_v46  ;;  %1842 = vmatpush1.bf16.msra.mxu1 %v2860_v24  ;;  %v2865_v24 = vld [vmem:[#allocation7 + $0xe4] ss:$8 sps:$4 sm:$0xff]  }
  0xf0   :  { %1537 = vmatprep.subr.bf16.mxu0 %v2769_v47  ;;  %1843 = vmatprep.subr.bf16.mxu1 %v2865_v24  ;;  %v2066_v24 = vld [vmem:[%s3263_s13 + $0x28] sm:$0xff] }
  0xf3   :  { %1538 = vmatpush1.bf16.msra.mxu0 %v2767_v48 }
  0xf4   :  { %1539 = vmatprep.subr.bf16.mxu0 %v2772_v49 }
  0xf7   :  { %1540 = vmatpush1.bf16.msra.mxu0 %v2770_v50 }
  0xf8   :  { %1550 = vmatprep.subr.bf16.mxu0 %v2775_v51  ;;  %v2773_v51 = vld [vmem:[#allocation5 + $0x100] ss:$8 sps:$4 sm:$0xff]  }
 0x18d   :  { %v986_v28 = vpop.f32.mrb[0].mxu0  ;;  %v1068_v44 = vpop.f32.mrb[0].mxu1 }
 0x18e   :  { %v2503_v31 = vadd.f32 %v986_v28, %v254_v22  ;;  %v2505_v32 = vadd.f32 %v1068_v44, %v262_v23  ;;  %v988_v33 = vpop.f32.mrb[1].mxu0  ;;  %v1070_v34 = vpop.f32.mrb[1].mxu1  ;;  %v2818_v22 = vld [vmem:[#allocation5 + $0x1f0] ss:$8 sps:$4 sm:$0xff]   ;;  %v1177_v28 = vld [vmem:[%s3255_s5] sm:$0x3] }
 0x18f   :  { %v2504_v35 = vadd.f32 %v988_v33, %v258_v25  ;;  %v2506_v36 = vadd.f32 %v1070_v34, %v266_v26  ;;  %v990_v37 = vpop.f32.mrb[2].mxu0  ;;  %v1072_v38 = vpop.f32.mrb[2].mxu1  ;;  %v2863_v25 = vld [vmem:[#allocation7 + $0xe0] ss:$8 sps:$4 sm:$0xff]   ;;  %v2868_v26 = vld [vmem:[#allocation7 + $0xf4] ss:$8 sps:$4 sm:$0xff]  }
 0x190   :  { %vm1075_vm0 = vcmp.ge.f32.partialorder %v2503_v31, 0.0  ;;  %v1101_v39 = vmul.f32 %v2503_v31, %v1084_v27  ;;  %vm1077_vm1 = vcmp.ge.f32.partialorder %v2505_v32, 0.0  ;;  %v1103_v40 = vmul.f32 %v2505_v32, %v1092_v10  ;;  %v991_v41 = vpop.f32.mrb[3].mxu0  ;;  %v1073_v42 = vpop.f32.mrb[3].mxu1  ;;  %1844 = vmatpush1.bf16.msra.mxu1 %v2863_v25  ;;  %v2866_v27 = vld [vmem:[#allocation7 + $0xf0] ss:$8 sps:$4 sm:$0xff]  }
 0x191   :  { %vm1076_vm2 = vcmp.ge.f32.partialorder %v2504_v35, 0.0  ;;  %v1102_v43 = vmul.f32 %v2504_v35, %v1088_v29  ;;  %vm1078_vm3 = vcmp.ge.f32.partialorder %v2506_v36, 0.0  ;;  %v1104_v45 = vmul.f32 %v2506_v36, %v1096_v30  ;;  %1845 = vmatprep.subr.bf16.mxu1 %v2868_v26  ;;  %v2869_v10 = vld [vmem:[%s3260_s10 + $0x40] sm:$0xff]   ;;  %v2067_v26 = vld [vmem:[%s3263_s13 + $0x30] sm:$0xff] }
 0x192   :  { %v1105_v46 = vsel %vm1075_vm0, %v2503_v31, %v1101_v39  ;;  %v3121_v47 = vsel %vm1077_vm1, %v2505_v32, %v1103_v40  ;;  %v1593_v44 = vld [vmem:[%s3256_s6] sm:$0x3]  ;;  %v1182_v29 = vrot.slane %v1177_v28, %v3104_v14  ;;  %v1186_v30 = vrot.slane %v1177_v28, %v3111_v18 }
 0x193   :  { %v1106_v48 = vsel %vm1076_vm2, %v2504_v35, %v1102_v43  ;;  %v1108_v49 = vsel %vm1078_vm3, %v2506_v36, %v1104_v45  ;;  %v1109_v52 = vpack.c.bf16 %v1105_v46, %v1105_v46  ;;  %v1111_v23 = vpack.c.bf16 %v3121_v47, %v3121_v47  ;;  %v2870_v45 = vld [vmem:[%s3260_s10] sm:$0xff]   ;;  %v2871_v47 = vld [vmem:[%s3260_s10 + $0x48] sm:$0xff]  }
 0x194   :  { %v1110_v50 = vpack.c.bf16 %v1106_v48, %v1106_v48  ;;  %v1112_v54 = vpack.c.bf16 %v1108_v49, %v1108_v49  ;;  %1846 = vmatpush1.bf16.msra.mxu1 %v2866_v27  ;;  %v1598_v31 = vrot.slane %v1593_v44, %v3104_v14  ;;  %v1602_v33 = vrot.slane %v1593_v44, %v3111_v18  ;;  %v2872_v48 = vld [vmem:[%s3260_s10 + $0x8] sm:$0xff]   ;;  %v2873_v49 = vld [vmem:[%s3260_s10 + $0x50] sm:$0xff]   ;;  %v2068_v27 = vld [vmem:[%s3263_s13 + $0x38] sm:$0xff] }
 0x195   :  { %2405 = vmatprep.subr.bf16.mxu1 %v2869_v10  ;;  %v2489_v10 = vpack.c.bf16 %v2068_v27, %v2067_v26  ;;  %v2069_v28 = vld [vmem:[%s3263_s13 + $0x40] sm:$0xff]  ;;  %v2070_v44 = vld [vmem:[%s3263_s13 + $0x48] sm:$0xff] }
 0x196   :  { %1541 = vmatprep.mubr.bf16.mxu0 %v1110_v50  ;;  %v2874_v50 = vld [vmem:[%s3260_s10 + $0x10] sm:$0xff]  }
 0x197   :  { %1542 = vmatmul.mubr.bf16.vlgmr.msra.gmra.mrb[4].mxu0 %v1109_v52  ;;  %v2876_v52 = vld [vmem:[%s3260_s10 + $0x18] sm:$0xff]  }
 0x198   :  { %1551 = vmatpush1.bf16.msra.mxu0 %v2773_v51  ;;  %1582 = vmatprep.mubr.bf16.mxu0 %v1112_v54  ;;  %v2875_v51 = vld [vmem:[%s3260_s10 + $0x58] sm:$0xff]   ;;  %v2878_v54 = vld [vmem:[%s3260_s10 + $0x20] sm:$0xff]  }
 0x199   :  { %1552 = vmatprep.subr.bf16.mxu0 %v2778_v53  ;;  %v2877_v53 = vld [vmem:[%s3260_s10 + $0x60] sm:$0xff]  }
 0x19c   :  { %1553 = vmatpush1.bf16.msra.mxu0 %v2776_v55  ;;  %v2879_v55 = vld [vmem:[%s3260_s10 + $0x68] sm:$0xff]  }
 0x19d   :  { %1554 = vmatprep.subr.bf16.mxu0 %v2781_v56  ;;  %v2880_v56 = vld [vmem:[%s3260_s10 + $0x28] sm:$0xff]  }
 0x1a0   :  { %1555 = vmatpush1.bf16.msra.mxu0 %v2779_v57  ;;  %v2881_v57 = vld [vmem:[%s3260_s10 + $0x70] sm:$0xff]  }
 0x1a1   :  { %1556 = vmatprep.subr.bf16.mxu0 %v2784_v58  ;;  %v2882_v58 = vld [vmem:[%s3260_s10 + $0x30] sm:$0xff]  }
 0x1a4   :  { %1557 = vmatpush1.bf16.msra.mxu0 %v2782_v59  ;;  %v2883_v59 = vld [vmem:[%s3260_s10 + $0x78] sm:$0xff]  }
 0x1a5   :  { %1558 = vmatprep.subr.bf16.mxu0 %v2787_v60  ;;  %v2884_v60 = vld [vmem:[%s3260_s10 + $0x38] sm:$0xff]  }
 0x1a8   :  { %1559 = vmatpush1.bf16.msra.mxu0 %v2785_v61  ;;  %v2963_v61 = vmov 0.0|0.0  }
 0x1a9   :  { %1560 = vmatprep.subr.bf16.mxu0 %v2790_v62  ;;  %v1643_v62 = vld [vmem:[%s3258_s8] sm:$0x3] }
 0x1ac   :  { %1561 = vmatpush1.bf16.msra.mxu0 %v2788_v63  ;;  %v1858_v63 = vld [vmem:[%s3259_s9] sm:$0x3] }
 0x1ad   :  { %1562 = vmatprep.subr.bf16.mxu0 %v2793_v0  ;;  %v1648_v0 = vrot.slane %v1643_v62, %v3104_v14 }
 0x1b0   :  { %1563 = vmatpush1.bf16.msra.mxu0 %v2791_v1  ;;  %v1652_v1 = vrot.slane %v1643_v62, %v3111_v18 }
 0x1b1   :  { %1564 = vmatprep.subr.bf16.mxu0 %v2796_v2  ;;  %v1863_v2 = vrot.slane %v1858_v63, %v3104_v14  ;;  %v2062_v14 = vld [vmem:[%s3263_s13 + $0x8] sm:$0xff] }
 0x1b4   :  { %1565 = vmatpush1.bf16.msra.mxu0 %v2794_v3 }
 0x1b5   :  { %1566 = vmatprep.subr.bf16.mxu0 %v2799_v4  ;;  %v1867_v4 = vrot.slane %v1858_v63, %v3111_v18 }
 0x1b8   :  { %1567 = vmatpush1.bf16.msra.mxu0 %v2797_v5 }
 0x1b9   :  { %1568 = vmatprep.subr.bf16.mxu0 %v2802_v6 }
 0x1bc   :  { %1569 = vmatpush1.bf16.msra.mxu0 %v2800_v7 }
 0x1bd   :  { %1570 = vmatprep.subr.bf16.mxu0 %v2805_v8 }
 0x1c0   :  { %1571 = vmatpush1.bf16.msra.mxu0 %v2803_v9 }
 0x1c1   :  { %1572 = vmatprep.subr.bf16.mxu0 %v2808_v11 }
 0x1c4   :  { %1573 = vmatpush1.bf16.msra.mxu0 %v2806_v12 }
 0x1c5   :  { %1574 = vmatprep.subr.bf16.mxu0 %v2811_v13  ;;  %v2061_v13 = vld [vmem:[%s3263_s13] sm:$0xff] }
 0x1c8   :  { %1575 = vmatpush1.bf16.msra.mxu0 %v2809_v15 }
 0x1c9   :  { %1576 = vmatprep.subr.bf16.mxu0 %v2814_v16 }
 0x1cc   :  { %1577 = vmatpush1.bf16.msra.mxu0 %v2812_v17  ;;  %v2480_v17 = vpack.c.bf16 %v2062_v14, %v2061_v13 }
 0x1cd   :  { %1578 = vmatprep.subr.bf16.mxu0 %v2817_v19 }
 0x1d0   :  { %1579 = vmatpush1.bf16.msra.mxu0 %v2815_v20  ;;  %v2063_v20 = vld [vmem:[%s3263_s13 + $0x10] sm:$0xff] }
 0x1d1   :  { %1580 = vmatprep.subr.bf16.mxu0 %v2820_v21  ;;  %v2064_v21 = vld [vmem:[%s3263_s13 + $0x18] sm:$0xff] }
 0x1d4   :  { %1581 = vmatpush1.bf16.msra.mxu0 %v2818_v22  ;;  %v2483_v22 = vpack.c.bf16 %v2064_v21, %v2063_v20 }
 0x1d7   :  { %1583 = vmatmul.mubr.bf16.vlgmr.msra.gmra.mrb[4].mxu0 %v1111_v23  ;;  %v2065_v23 = vld [vmem:[%s3263_s13 + $0x20] sm:$0xff] }
 0x1d8   :  { %v2486_v25 = vpack.c.bf16 %v2066_v24, %v2065_v23 }
 0x2aa   :  { %v1584_v32 = vpop.f32.mrb[4].mxu0 }
 0x2ab   :  { %v2507_v34 = vadd.f32 %v1584_v32, %v1182_v29  ;;  %v1586_v35 = vpop.f32.mrb[5].mxu0  ;;  %v2492_v29 = vpack.c.bf16 %v2070_v44, %v2069_v28 }
 0x2ac   :  { %v2508_v36 = vadd.f32 %v1586_v35, %v1186_v30  ;;  %v1588_v37 = vpop.f32.mrb[6].mxu0  ;;  %v2071_v30 = vld [vmem:[%s3263_s13 + $0x50] sm:$0xff] }
 0x2ad   :  { %vm1591_vm4 = vcmp.ge.f32.partialorder %v2507_v34, 0.0  ;;  %v1605_v38 = vmul.f32 %v2507_v34, %v1598_v31  ;;  %v1589_v39 = vpop.f32.mrb[7].mxu0  ;;  %v2072_v31 = vld [vmem:[%s3263_s13 + $0x58] sm:$0xff] }
 0x2ae   :  { %vm1592_vm5 = vcmp.ge.f32.partialorder %v2508_v36, 0.0  ;;  %v1606_v40 = vmul.f32 %v2508_v36, %v1602_v33  ;;  %v2495_v32 = vpack.c.bf16 %v2072_v31, %v2071_v30  ;;  %v2073_v33 = vld [vmem:[%s3263_s13 + $0x60] sm:$0xff]  ;;  %v2076_v37 = vld [vmem:[%s3263_s13 + $0x78] sm:$0xff]  ;;  %v2965_v39 = vmov 0.0  }
 0x2af   :  { %v1607_v41 = vsel %vm1591_vm4, %v2507_v34, %v1605_v38  ;;  %v2074_v34 = vld [vmem:[%s3263_s13 + $0x68] sm:$0xff] }
 0x2b0   :  { %v1608_v42 = vsel %vm1592_vm5, %v2508_v36, %v1606_v40  ;;  %v1609_v46 = vpack.c.bf16 %v1607_v41, %v1607_v41  ;;  %v2498_v35 = vpack.c.bf16 %v2074_v34, %v2073_v33  ;;  %v2075_v36 = vld [vmem:[%s3263_s13 + $0x70] sm:$0xff]  ;;  %v2386_v41 = vld [vmem:[%s3261_s11] ss:$0 sm:$0xff] }
 0x2b1   :  { %v1610_v43 = vpack.c.bf16 %v1608_v42, %v1608_v42  ;;  %v2501_v38 = vpack.c.bf16 %v2076_v37, %v2075_v36 }
 0x2b3   :  { %1847 = vmatprep.mubr.bf16.mxu1 %v1610_v43 }
 0x2b4   :  { %1848 = vmatmul.mubr.bf16.vlgmr.msra.gmra.mrb[4].mxu1 %v1609_v46  ;;  %v2403_v46 = vld [vmem:[%s3262_s12] ss:$0 sm:$0xff] }
 0x2b5   :  { %2406 = vmatpush3.bf16.msra.mxu1 %v2870_v45 }
 0x2b6   :  { %2407 = vmatprep.subr.bf16.mxu1 %v2871_v47 }
 0x2b9   :  { %2408 = vmatpush3.bf16.msra.mxu1 %v2872_v48 }
 0x2ba   :  { %2409 = vmatprep.subr.bf16.mxu1 %v2873_v49 }
 0x2bd   :  { %2410 = vmatpush3.bf16.msra.mxu1 %v2874_v50 }
 0x2be   :  { %2411 = vmatprep.subr.bf16.mxu1 %v2875_v51  ;;  %v2404_v51 = vld [vmem:[#allocation2] ss:$0 sm:$0xff] }
 0x2c1   :  { %2412 = vmatpush3.bf16.msra.mxu1 %v2876_v52 }
 0x2c2   :  { %2413 = vmatprep.subr.bf16.mxu1 %v2877_v53 }
 0x2c5   :  { %2414 = vmatpush3.bf16.msra.mxu1 %v2878_v54 }
 0x2c6   :  { %2415 = vmatprep.subr.bf16.mxu1 %v2879_v55 }
 0x2c9   :  { %2416 = vmatpush3.bf16.msra.mxu1 %v2880_v56 }
 0x2ca   :  { %2417 = vmatprep.subr.bf16.mxu1 %v2881_v57 }
 0x2cd   :  { %2418 = vmatpush3.bf16.msra.mxu1 %v2882_v58 }
 0x2ce   :  { %2419 = vmatprep.subr.bf16.mxu1 %v2883_v59 }
 0x2d1   :  { %2420 = vmatpush3.bf16.msra.mxu1 %v2884_v60 }
 0x2d2   :  { %2479 = vmatprep.subr.bf16.mxu1 %v2963_v61 }
 0x387   :  { %v1849_v3 = vpop.f32.mrb[4].mxu1 }
 0x388   :  { %v1850_v5 = vadd.f32 %v1849_v3, %v1648_v0  ;;  %v1851_v6 = vpop.f32.mrb[5].mxu1 }
 0x389   :  { %v1852_v7 = vadd.f32 %v1851_v6, %v1652_v1  ;;  %v1853_v8 = vpop.f32.mrb[6].mxu1 }
 0x38a   :  { %vm1856_vm6 = vcmp.ge.f32.partialorder %v1850_v5, 0.0  ;;  %v1870_v9 = vmul.f32 %v1863_v2, %v1850_v5  ;;  %v1854_v11 = vpop.f32.mrb[7].mxu1 }
 0x38b   :  { %vm1857_vm7 = vcmp.ge.f32.partialorder %v1852_v7, 0.0  ;;  %v1871_v12 = vmul.f32 %v1867_v4, %v1852_v7 }
 0x38c   :  { %v1872_v15 = vsel %vm1856_vm6, %v1850_v5, %v1870_v9 }
 0x38d   :  { %v1873_v16 = vsel %vm1857_vm7, %v1852_v7, %v1871_v12  ;;  %v1874_v19 = vpack.c.bf16 %v1872_v15, %v1872_v15 }
 0x38e   :  { %v1875_v18 = vpack.c.bf16 %v1873_v16, %v1873_v16 }
 0x390   :  { %2043 = vmatprep.mubr.bf16.mxu1 %v1875_v18 }
 0x391   :  { %2044 = vmatmul.mubr.bf16.vlgmr.msra.gmra.mrb[8].mxu1 %v1874_v19 }
 0x392   :  { %2481 = vmatpush3.bf16.msra.mxu1 %v2480_v17  ;;  %2476 = vmatprep.mubr.msk.f32.mxu1 %vm2964_vm8, %v2965_v39 }
 0x393   :  { %2482 = vmatprep.subr.bf16.mxu1 %v2963_v61 }
 0x396   :  { %2484 = vmatpush3.bf16.msra.mxu1 %v2483_v22 }
 0x397   :  { %2485 = vmatprep.subr.bf16.mxu1 %v2963_v61 }
 0x39a   :  { %2487 = vmatpush3.bf16.msra.mxu1 %v2486_v25 }
 0x39b   :  { %2488 = vmatprep.subr.bf16.mxu1 %v2963_v61 }
 0x39e   :  { %2490 = vmatpush3.bf16.msra.mxu1 %v2489_v10 }
 0x39f   :  { %2491 = vmatprep.subr.bf16.mxu1 %v2963_v61 }
 0x3a2   :  { %2493 = vmatpush3.bf16.msra.mxu1 %v2492_v29 }
 0x3a3   :  { %2494 = vmatprep.subr.bf16.mxu1 %v2963_v61 }
 0x3a6   :  { %2496 = vmatpush3.bf16.msra.mxu1 %v2495_v32 }
 0x3a7   :  { %2497 = vmatprep.subr.bf16.mxu1 %v2963_v61 }
 0x3aa   :  { %2499 = vmatpush3.bf16.msra.mxu1 %v2498_v35 }
 0x3ab   :  { %2500 = vmatprep.subr.bf16.mxu1 %v2963_v61 }
 0x3ae   :  { %2502 = vmatpush3.bf16.msra.mxu1 %v2501_v38 }
 0x464   :  { %v2421_v40 = vpop.f32.mrb[8].mxu1 }
 0x465   :  { %v2422_v42 = vpop.f32.mrb[9].mxu1 }
 0x466   :  { %v2423_v43 = vadd.f32 %v2422_v42, %v2421_v40  ;;  %v2424_v45 = vpop.f32.mrb[10].mxu1 }
 0x467   :  { %v2425_v47 = vpop.f32.mrb[11].mxu1 }
 0x468   :  { %v2046_v48 = vadd.f32 %v2423_v43, %v2386_v41 }
 0x46a   :  { %v2059_v49 = vmul.f32 %v2403_v46, %v2046_v48  ;;  %vm2051_vm9 = vcmp.ge.f32.partialorder %v2046_v48, 0.0 }
 0x46c   :  { %v2060_v50 = vsel %vm2051_vm9, %v2046_v48, %v2059_v49 }
 0x46d   :  { %2477 = vmatmul.mubr.f32.vlgmr.msra.gmra.mrb[12].mxu1 %v2060_v50 }
 0x540   :  { %v2150_v52 = vpop.f32.mrb[12].mxu1 }
 0x541   :  { %v2151_v53 = vadd.f32 %v2404_v51, %v2150_v52  ;;  %v2478_v54 = vpop.f32.mrb[13].mxu1 }
 0x543   :  { %2155 = vst.msk [vmem:[%s3265_s15] sm:$0x3] %vm2154_vm10, %v2151_v53 }
 0x544   :  { %2160 = vsyncpa [#allocation4], 1 }
 0x545   :  { %2161 = vsyncpa [#allocation6], 1 }

</bundles_post_ra>
